<compile_context>
chip_gen: v7x
topology: tpu7x:2x2x1
jax: 0.10.0
libtpu: 0.0.40
codegen_flags: <defaults>
</compile_context>

<pallas_src>
import functools

import jax
import jax.numpy as jnp
from jax.experimental import pallas as pl
from jax.experimental.pallas import tpu as pltpu


# ------------------------------- Pallas kernel --------------------------------
def _bottleneck_kernel(dist_ref, mu_inv_ref, neg_half_sig2_ref, matching_t_ref,
                       out_ref, *, hard_max_dist):
    # dist_ref:          (1, T)        f32   pair distances, pairs on the lane axis
    # mu_inv_ref:        (n_bare, 1)   f32   1 / mu
    # neg_half_sig2_ref: (n_bare, 1)   f32   -0.5 * sigma^2
    # matching_t_ref:    (n_dist, n_bare) f32 (resident)
    # out_ref:           (n_dist, T)   f32   lane-dense output tile
    d = dist_ref[...]                                    # (1, T)
    inv_d = 1.0 / d                                      # (1, T)  exact reciprocal

    # Gaussian-in-inverse-distance sensitivities, lane-dense (n_bare, T).
    diff = inv_d - mu_inv_ref[...]                       # (n_bare, T)
    gauss = jnp.exp(diff * diff * neg_half_sig2_ref[...])  # EUP

    # cos^2 hard cutoff (per pair, row vector).
    c = jnp.cos((jnp.pi * 0.5 / hard_max_dist) * d)      # (1, T)
    cut = jnp.where(d <= hard_max_dist, c * c, 0.0)      # (1, T)

    sense = gauss * cut                                   # (n_bare, T) f32

    # bottleneck projection: (n_dist, n_bare) @ (n_bare, T) -> lane-dense (n_dist, T)
    out_ref[...] = jnp.dot(matching_t_ref[...], sense,
                           preferred_element_type=jnp.float32)


# --------------------------------- wrapper -------------------------------------
def sensitivity_bottleneck(distflat, params, *, hard_max_dist, tile_p=512):
    """Pallas forward of SensitivityBottleneck.

    distflat : (P,) float32 pair distances
    params   : {"mu": (1, n_bare), "sigma": (1, n_bare), "matching": (n_bare, n_dist)}
    returns  : (P, n_dist) float32
    """
    P = distflat.shape[0]
    n_bare, n_dist = params["matching"].shape

    # Pairs-on-lanes tiling: clamp the tile for small inputs, pad P up to a tile multiple.
    tile_p = max(128, min(int(tile_p), -(-P // 128) * 128))
    p_pad = -(-P // tile_p) * tile_p

    # Padded distances sit beyond the hard cutoff -> their columns are exactly zero
    # (and are sliced off below anyway).
    dist_row = jnp.pad(distflat.astype(jnp.float32), (0, p_pad - P),
                       constant_values=float(hard_max_dist) + 1.0).reshape(1, p_pad)

    # Host-side constant folding / layout prep (tiny arrays).
    mu_inv = (1.0 / params["mu"].astype(jnp.float32)).reshape(n_bare, 1)
    neg_half_sig2 = (-0.5 * params["sigma"].astype(jnp.float32) ** 2).reshape(n_bare, 1)
    matching_t = params["matching"].astype(jnp.float32).T          # (n_dist, n_bare)

    kernel = functools.partial(_bottleneck_kernel, hard_max_dist=float(hard_max_dist))

    out_t = pl.pallas_call(
        kernel,
        out_shape=jax.ShapeDtypeStruct((n_dist, p_pad), jnp.float32),
        grid_spec=pltpu.PrefetchScalarGridSpec(
            num_scalar_prefetch=0,
            grid=(p_pad // tile_p,),
            in_specs=[
                pl.BlockSpec((1, tile_p), lambda i: (0, i)),        # distances: streamed
                pl.BlockSpec((n_bare, 1), lambda i: (0, 0)),        # 1/mu: resident
                pl.BlockSpec((n_bare, 1), lambda i: (0, 0)),        # -0.5*sigma^2: resident
                pl.BlockSpec((n_dist, n_bare), lambda i: (0, 0)),   # matching^T: resident
            ],
            out_specs=pl.BlockSpec((n_dist, tile_p), lambda i: (0, i)),
        ),
        compiler_params=pltpu.CompilerParams(
            dimension_semantics=("parallel",)),
    )(dist_row, mu_inv, neg_half_sig2, matching_t)

    # Transpose back to the module's (P, n_dist) layout (tiny: 64 B/pair each way; a
    # downstream consumer that tolerates the transposed layout could skip this pass).
    return out_t[:, :P].T


# ------------------------------ pure-JAX reference -----------------------------
def sensitivity_bottleneck_ref(distflat, params, *, hard_max_dist):
    d = distflat.astype(jnp.float32)[:, None]                  # (P, 1)
    mu_inv = 1.0 / params["mu"]                                # (1, n_bare)
    sigma = params["sigma"]                                    # (1, n_bare)
    nondim = (1.0 / d - mu_inv) ** 2 * sigma ** 2
    base = jnp.exp(-0.5 * nondim)
    cut = jnp.cos(jnp.pi / 2 * distflat / hard_max_dist) ** 2
    cut = cut * (distflat <= hard_max_dist).astype(jnp.float32)
    sense = base * cut[:, None]
    return jnp.dot(sense, params["matching"],
                   precision=jax.lax.Precision.HIGHEST)


if __name__ == "__main__":
    # Small shapes consistent with the module.
    n_pairs = 200
    n_dist_bare, n_dist = 32, 16
    min_soft, max_soft, hard_max = 0.75, 5.0, 6.0

    key = jax.random.PRNGKey(0)
    k_d, k_m = jax.random.split(key)

    distflat = jax.random.uniform(k_d, (n_pairs,), jnp.float32, 0.5, 7.0)

    # Parameter init mirroring the PyTorch __init__:
    #   mu    = 1 / linspace(1/max_soft, 1/min_soft, n_bare)   (unsqueeze(0))
    #   sigma = fill(min_soft * 2 * n_bare)                    (unsqueeze(0))
    #   matching = orthogonal_((n_bare, n_dist))
    mu = (1.0 / jnp.linspace(1.0 / max_soft, 1.0 / min_soft, n_dist_bare,
                             dtype=jnp.float32))[None, :]
    sigma = jnp.full((1, n_dist_bare), min_soft * 2 * n_dist_bare, jnp.float32)
    m0 = jax.random.normal(k_m, (n_dist_bare, n_dist), jnp.float32)
    q, r = jnp.linalg.qr(m0)
    matching = (q * jnp.sign(jnp.diag(r))[None, :]).astype(jnp.float32)

    params = {"mu": mu, "sigma": sigma, "matching": matching}

    out = sensitivity_bottleneck(distflat, params, hard_max_dist=hard_max)
    out = jax.block_until_ready(out)

    ref = sensitivity_bottleneck_ref(distflat, params, hard_max_dist=hard_max)
    assert out.shape == (n_pairs, n_dist)
    # Tolerance hedges against the default-precision MXU path for the (tiny) f32 contraction;
    # with full f32 passes the agreement is ~1e-5.
    assert jnp.allclose(out, ref, rtol=2e-2, atol=2e-2), float(jnp.max(jnp.abs(out - ref)))
    print("KERNEL_OK")
</pallas_src>

<mosaic_0001>
module attributes {stable_mosaic.version = 11 : i64} {
  func.func @_bottleneck_kernel(%arg0: i32, %arg1: memref<1x256xf32, #tpu.memory_space<vmem>>, %arg2: memref<32x1xf32, #tpu.memory_space<vmem>>, %arg3: memref<32x1xf32, #tpu.memory_space<vmem>>, %arg4: memref<16x32xf32, #tpu.memory_space<vmem>>, %arg5: memref<16x256xf32, #tpu.memory_space<vmem>>) attributes {dimension_semantics = [#tpu.dimension_semantics<parallel>], iteration_bounds = array<i64: 1>, scalar_prefetch = 0 : i64, scratch_operands = 0 : i64, tpu.core_type = #tpu.core_type<tc>, window_params = [{transform_indices = @transform_0, window_bounds = array<i64: 1, 256>}, {pipeline_mode = #tpu.pipeline_mode<synchronous>, transform_indices = @transform_1, window_bounds = array<i64: 32, 1>}, {pipeline_mode = #tpu.pipeline_mode<synchronous>, transform_indices = @transform_2, window_bounds = array<i64: 32, 1>}, {pipeline_mode = #tpu.pipeline_mode<synchronous>, transform_indices = @transform_3, window_bounds = array<i64: 16, 32>}, {transform_indices = @transform_4, window_bounds = array<i64: 16, 256>}]} {
    %c0 = arith.constant 0 : index
    %c0_0 = arith.constant 0 : index
    %0 = vector.load %arg1[%c0, %c0_0] : memref<1x256xf32, #tpu.memory_space<vmem>>, vector<1x256xf32>
    %cst = arith.constant 1.000000e+00 : f32
    %1 = vector.broadcast %cst : f32 to vector<1x256xf32>
    %2 = arith.divf %1, %0 : vector<1x256xf32>
    %c0_1 = arith.constant 0 : index
    %c0_2 = arith.constant 0 : index
    %3 = vector.load %arg2[%c0_1, %c0_2] : memref<32x1xf32, #tpu.memory_space<vmem>>, vector<32x1xf32>
    %4 = vector.broadcast %2 : vector<1x256xf32> to vector<32x256xf32>
    %5 = vector.broadcast %3 : vector<32x1xf32> to vector<32x256xf32>
    %6 = arith.subf %4, %5 : vector<32x256xf32>
    %7 = arith.mulf %6, %6 : vector<32x256xf32>
    %c0_3 = arith.constant 0 : index
    %c0_4 = arith.constant 0 : index
    %8 = vector.load %arg3[%c0_3, %c0_4] : memref<32x1xf32, #tpu.memory_space<vmem>>, vector<32x1xf32>
    %9 = vector.broadcast %8 : vector<32x1xf32> to vector<32x256xf32>
    %10 = arith.mulf %7, %9 : vector<32x256xf32>
    %11 = math.exp %10 : vector<32x256xf32>
    %cst_5 = arith.constant 0.261799395 : f32
    %12 = vector.broadcast %cst_5 : f32 to vector<1x256xf32>
    %13 = arith.mulf %12, %0 : vector<1x256xf32>
    %14 = math.cos %13 : vector<1x256xf32>
    %cst_6 = arith.constant 6.000000e+00 : f32
    %15 = vector.broadcast %cst_6 : f32 to vector<1x256xf32>
    %16 = arith.cmpf ole, %0, %15 : vector<1x256xf32>
    %17 = arith.mulf %14, %14 : vector<1x256xf32>
    %cst_7 = arith.constant 0.000000e+00 : f32
    %18 = vector.broadcast %cst_7 : f32 to vector<1x256xf32>
    %19 = arith.select %16, %17, %18 : vector<1x256xi1>, vector<1x256xf32>
    %20 = vector.broadcast %19 : vector<1x256xf32> to vector<32x256xf32>
    %21 = arith.mulf %11, %20 : vector<32x256xf32>
    %c0_8 = arith.constant 0 : index
    %c0_9 = arith.constant 0 : index
    %22 = vector.load %arg4[%c0_8, %c0_9] : memref<16x32xf32, #tpu.memory_space<vmem>>, vector<16x32xf32>
    %cst_10 = arith.constant dense<0.000000e+00> : vector<16x256xf32>
    %23 = tpu.matmul %22, %21, %cst_10 {dimension_numbers = #tpu.dot_dimension_numbers<[1], [0], [0], [1], [0, 0, 1, 1], [], []>} : vector<16x32xf32>, vector<32x256xf32>, vector<16x256xf32> -> vector<16x256xf32>
    %c0_11 = arith.constant 0 : index
    %c0_12 = arith.constant 0 : index
    %24 = vector.load %arg5[%c0_11, %c0_12] : memref<16x256xf32, #tpu.memory_space<vmem>>, vector<16x256xf32>
    tpu.vector_store %arg5[%c0_11, %c0_12], %23 {strides = array<i32>} : memref<16x256xf32, #tpu.memory_space<vmem>>, vector<16x256xf32>,
    return
  }
  func.func @transform_0(%arg0: i32) -> (i32, i32) {
    %c0_i32 = arith.constant 0 : i32
    %c0_i32_0 = arith.constant 0 : i32
    return %c0_i32, %arg0 : i32, i32
  }
  func.func @transform_1(%arg0: i32) -> (i32, i32) {
    %c0_i32 = arith.constant 0 : i32
    %c0_i32_0 = arith.constant 0 : i32
    %c0_i32_1 = arith.constant 0 : i32
    return %c0_i32, %c0_i32_0 : i32, i32
  }
  func.func @transform_2(%arg0: i32) -> (i32, i32) {
    %c0_i32 = arith.constant 0 : i32
    %c0_i32_0 = arith.constant 0 : i32
    %c0_i32_1 = arith.constant 0 : i32
    return %c0_i32, %c0_i32_0 : i32, i32
  }
  func.func @transform_3(%arg0: i32) -> (i32, i32) {
    %c0_i32 = arith.constant 0 : i32
    %c0_i32_0 = arith.constant 0 : i32
    %c0_i32_1 = arith.constant 0 : i32
    return %c0_i32, %c0_i32_0 : i32, i32
  }
  func.func @transform_4(%arg0: i32) -> (i32, i32) {
    %c0_i32 = arith.constant 0 : i32
    %c0_i32_0 = arith.constant 0 : i32
    return %c0_i32, %arg0 : i32, i32
  }
}

</mosaic_0001>

<bundles_post_ra>
// kernel: tpu_custom_call.1
= control target key start
LH: loop header
LB: loop body
LE: loop exit
PB: predicated region body
PF: predicated region fallthrough
CT: control target
= control target key end

     0   :  { %v433_v2 = vmov 0   ;;  %s540_s0 = inlined_call_operand.vmem [shape: f32[1,256], index: 0, kind: input, shape index: {}]   ;;  %s541_s1 = inlined_call_operand.vmem [shape: f32[32,1], index: 1, kind: input, shape index: {}]   ;;  %s542_s2 = inlined_call_operand.vmem [shape: f32[32,1], index: 2, kind: input, shape index: {}]   ;;  %s543_s3 = inlined_call_operand.vmem [shape: f32[16,32], index: 3, kind: input, shape index: {}]   ;;  %s544_s4 = inlined_call_operand.hbm [shape: f32[16,256], index: 4, kind: output, shape index: {}]  }
   0x1   :  { %v23_v0 = vld [vmem:[%s541_s1 + $0x10] sm:$0xff]  ;;  %v21_v1 = vld [vmem:[%s541_s1] sm:$0xff]  ;;  %386 = vset.pattern.permute.xlu1 %v433_v2  ;;  %385 = vset.pattern.permute.xlu0 %v433_v2  ;;  %v24_v4 = vld [vmem:[%s541_s1 + $0x18] sm:$0xff] }
   0x2   :  { %48 = vperm.xlu1 %386, %v23_v0   ;;  %38 = vperm.xlu0 %385, %v21_v1   ;;  %v478_v3 = vld [vmem:[%s540_s0] sm:$0x3]  ;;  %v22_v5 = vld [vmem:[%s541_s1 + $0x8] sm:$0xff] }
   0x3   :  { %v487_v6 = vmul.f32 0.2617994, %v478_v3 }
   0x5   :  { %v124_v7 = vand.u32 2139095040, %v487_v6 }
   0x6   :  { %9 = vsyncpa [#allocation3], 0  ;;  %53 = vperm.xlu1 %386, %v24_v4   ;;  %43 = vperm.xlu0 %385, %v22_v5   ;;  %v73_v8 = vld [vmem:[%s542_s2 + $0x8] sm:$0xff]  ;;  %v72_v9 = vld [vmem:[%s542_s2] sm:$0xff]  ;;  %v121_v11 = vand.u32 2147483647, %v487_v6  ;;  %vm213_vm12 = vweird.f32 %v487_v6 }
   0x7   :  { %v125_v10 = vshrl.u32 %v124_v7, 23  ;;  %v75_v13 = vld [vmem:[%s542_s2 + $0x18] sm:$0xff]  ;;  %v74_v14 = vld [vmem:[%s542_s2 + $0x10] sm:$0xff]  ;;  %v434_v22 = vmov 683565275   ;;  %v440_v4 = vmov 0.0  }
   0x8   :  { %v128_v16 = vand.u32 8388607, %v121_v11  ;;  %v435_v24 = vmov 2475754826   ;;  %v436_v26 = vmov 2131351028   ;;  %319 = vmatprep.mubr.f32.mxu0 %v440_v4  ;;  %325 = vmatprep.mubr.f32.mxu1 %v440_v4 }
   0x9   :  { %v352_v12 = vadd.s32 4294967169, %v125_v10  ;;  %v437_v28 = vmov 2102212464   ;;  %v438_v30 = vmov 920167782   ;;  %vm123_vm7 = vcmp.lt.s32.totalorder %v487_v6, 0 }
   0xa   :  { %83 = vperm.xlu1 %386, %v73_v8   ;;  %78 = vperm.xlu0 %385, %v72_v9   ;;  %v129_v20 = vor.u32 8388608, %v128_v16  ;;  %v439_v37 = vmov 1326507024   ;;  %vm122_vm8 = vcmp.le.f32.partialorder %v121_v11, 0.7853982  ;;  %vm224_vm13 = vcmp.le.f32.partialorder %v478_v3, 6.0 }
   0xb   :  { %v131_v15 = vadd.s32 1, %v352_v12  ;;  %vm248_vm14 = vcmask 261120   ;;  %s441_s8 = smov [#allocation2]  }
   0xc   :  { %v169_v39 = vshll.u32 %v129_v20, 8  ;;  %s341_s9 = sshll.u32 %s441_s8, 4  ;;  %s342_s9 = int_to_ptr.vmem [resolvable:$true] %s341_s9 }
   0xd   :  { %vm132_vm0 = vcmp.gt.s32.totalorder %v131_v15, 0  ;;  %s409_s10 = scalar_lea.vmem %s342_s9, 512  ;;  %p414_p1 = scmp.lt.s32.totalorder %s342_s9, %s342_s9 }
   0xe   :  { %93 = vperm.xlu1 %386, %v75_v13   ;;  %88 = vperm.xlu0 %385, %v74_v14   ;;  %v133_v17 = vsel %vm132_vm0, %v131_v15, 0  ;;  %p410_p0 = scmp.ne.s32.totalorder %s342_s9, %s409_s10  ;;  %p415_p2 = scmp.lt.s32.totalorder %s409_s10, %s409_s10 }
   0xf   :  { %v135_v18 = vand.u32 31, %v133_v17  ;;  %v134_v19 = vshrl.u32 %v133_v17, 5 }
  0x10   :  { %p416_p3 = por %p415_p2, %p414_p1 }
  0x11   :  { %v136_v21 = vsub.s32 32, %v135_v18  ;;  %v138_v23 = vshll.u32 %v434_v22, %v135_v18  ;;  %v141_v25 = vshll.u32 %v435_v24, %v135_v18  ;;  %v144_v27 = vshll.u32 %v436_v26, %v135_v18 }
  0x12   :  { %v147_v29 = vshll.u32 %v437_v28, %v135_v18  ;;  %v150_v31 = vshll.u32 %v438_v30, %v135_v18  ;;  %vm153_vm1 = vcmp.lt.s32.totalorder %v134_v19, 1  ;;  %vm156_vm2 = vcmp.lt.s32.totalorder %v134_v19, 4  ;;  %p417_p4 = pnand %p416_p3, %p410_p0 }
  0x13   :  { %v137_v32 = vshrl.u32 %v434_v22, %v136_v21  ;;  %v139_v33 = vshrl.u32 %v435_v24, %v136_v21  ;;  %v142_v34 = vshrl.u32 %v436_v26, %v136_v21  ;;  %v145_v35 = vshrl.u32 %v437_v28, %v136_v21 }
  0x14   :  { %v148_v36 = vshrl.u32 %v438_v30, %v136_v21  ;;  %v151_v38 = vshrl.u32 %v439_v37, %v136_v21  ;;  %vm154_vm3 = vcmp.lt.s32.totalorder %v134_v19, 2  ;;  %vm155_vm4 = vcmp.lt.s32.totalorder %v134_v19, 3 }
  0x15   :  { %v140_v40 = vor.u32 %v139_v33, %v138_v23  ;;  %v143_v41 = vor.u32 %v142_v34, %v141_v25  ;;  %v146_v42 = vor.u32 %v145_v35, %v144_v27 }
  0x16   :  { %v149_v43 = vor.u32 %v148_v36, %v147_v29  ;;  %v152_v44 = vor.u32 %v151_v38, %v150_v31 }
  0x17   :  { %v157_v45 = vsel %vm153_vm1, %v137_v32, %v140_v40  ;;  %v158_v46 = vsel %vm156_vm2, %v146_v42, 2102212464  ;;  %v161_v47 = vsel %vm153_vm1, %v140_v40, %v143_v41  ;;  %v165_v48 = vsel %vm153_vm1, %v143_v41, %v146_v42 }
  0x18   :  { %v159_v49 = vsel %vm155_vm4, %v143_v41, %v158_v46  ;;  %v162_v50 = vsel %vm156_vm2, %v149_v43, 920167782  ;;  %v166_v51 = vsel %vm156_vm2, %v152_v44, 1326507024 }
  0x19   :  { %v163_v52 = vsel %vm155_vm4, %v146_v42, %v162_v50  ;;  %v167_v53 = vsel %vm155_vm4, %v149_v43, %v166_v51  ;;  %v160_v54 = vsel %vm154_vm3, %v157_v45, %v159_v49  ;;  %v26_v42 = vlaneseq }
  0x1a   :  { %v164_v55 = vsel %vm154_vm3, %v161_v47, %v163_v52  ;;  %v168_v56 = vsel %vm154_vm3, %v165_v48, %v167_v53  ;;  %v176_v61 = vmul.u32 %v169_v39, %v160_v54 }
  0x1b   :  { %v505_v57 = vmul.u32.u64.low %v169_v39, %v168_v56  ;;  %v506_v58 = vmul.u32.u64.high %v169_v39, %v168_v56, %v505_v57  ;;  %v508_v59 = vmul.u32.u64.low %v169_v39, %v164_v55  ;;  %v509_v60 = vmul.u32.u64.high %v169_v39, %v164_v55, %v508_v59 }
  0x1c   :  { %v27_v43 = vshrl.u32 %v26_v42, 7 }
  0x1d   :  { %vm178_vm5 = vc.u32 %v506_v58, %v508_v59  ;;  %v179_v62 = vadd.s32 1, %v509_v60  ;;  %v177_v13 = vadd.s32 %v508_v59, %v506_v58 }
  0x1e   :  { %v28_v44 = vsub.s32 0, %v27_v43  ;;  %v32_v46 = vsub.s32 1, %v27_v43 }
  0x1f   :  { %v180_v63 = vsel %vm178_vm5, %v179_v62, %v509_v60 }
  0x20   :  { %v181_v0 = vadd.s32 %v180_v63, %v176_v61 }
  0x22   :  { %v182_v1 = vadd.s32 536870912, %v181_v0 }
  0x24   :  { %v183_v2 = vshrl.u32 %v182_v1, 30 }
  0x26   :  { %v184_v5 = vshll.u32 %v183_v2, 30  ;;  %v207_v27 = vsub.s32 4, %v183_v2 }
  0x28   :  { %v185_v7 = vsub.s32 %v181_v0, %v184_v5  ;;  %v208_v30 = vsel %vm123_vm7, %v207_v27, %v183_v2 }
  0x29   :  { %v210_v31 = vsel %vm122_vm8, 0, %v208_v30 }
  0x2a   :  { %v187_v8 = vsub.s32 0, %v185_v7  ;;  %v214_v32 = vand.u32 3, %v210_v31 }
  0x2c   :  { %v353_v9 = vmin.u32 %v187_v8, %v185_v7  ;;  %vm219_vm9 = vcmp.eq.s32.totalorder %v214_v32, 2  ;;  %vm216_vm10 = vcmp.eq.s32.totalorder %v214_v32, 0  ;;  %vm215_vm11 = vcmp.lt.s32.totalorder %v214_v32, 2 }
  0x2e   :  { %v189_v10 = vclz %v353_v9 }
  0x30   :  { %v354_v12 = vadd.s32 4294967294, %v189_v10 }
  0x32   :  { %vm355_vm6 = vcmp.lt.s32.totalorder %v354_v12, 0 }
  0x33   :  { %v192_v14 = vsel %vm355_vm6, 0, %v354_v12 }
  0x34   :  { %v193_v15 = vsub.s32 32, %v192_v14  ;;  %v194_v16 = vshll.u32 %v185_v7, %v192_v14  ;;  %v197_v17 = vsub.s32 4294967266, %v192_v14 }
  0x36   :  { %v195_v18 = vshrl.u32 %v177_v13, %v193_v15  ;;  %v198_v19 = vadd.s32 127, %v197_v17 }
  0x38   :  { %v196_v20 = vor.u32 %v195_v18, %v194_v16  ;;  %v199_v21 = vshll.u32 %v198_v19, 23 }
  0x3a   :  { %v200_v22 = vor.u32 4788187, %v199_v21  ;;  %v203_v23 = vcvt.s32.f32 %v196_v20 }
  0x3c   :  { %v201_v24 = vand.u32 2147483647, %v200_v22 }
  0x3e   :  { %v204_v25 = vmul.f32 %v203_v23, %v201_v24 }
  0x40   :  { %v205_v26 = vxor.u32 2147483648, %v204_v25 }
  0x42   :  { %v206_v28 = vsel %vm123_vm7, %v205_v26, %v204_v25 }
  0x43   :  { %v209_v29 = vsel %vm122_vm8, %v487_v6, %v206_v28 }
  0x44   :  { %387 = vcosq.f32 %v209_v29 }
  0x45   :  { %389 = vsinq.f32 %v209_v29 }
  0x46   :  { %391 = vrcp.f32 %v478_v3 }
  0x4e   :  { %v388_v33 = vpop.eup %387 }
  0x4f   :  { %v390_v34 = vpop.eup %389  ;;  %v220_v35 = vxor.u32 2147483648, %v388_v33 }
  0x50   :  { %v217_v36 = vxor.u32 2147483648, %v390_v34  ;;  %v392_v45 = vpop.eup %391 }
  0x51   :  { %v221_v11 = vsel %vm219_vm9, %v220_v35, %v390_v34  ;;  %v29_v47 = vrot.slane %v392_v45, %v28_v44  ;;  %v33_v48 = vrot.slane %v392_v45, %v32_v46 }
  0x52   :  { %v218_v37 = vsel %vm216_vm10, %v388_v33, %v217_v36 }
  0x53   :  { %v222_v38 = vsel %vm215_vm11, %v218_v37, %v221_v11 }
  0x54   :  { %v223_v39 = vsel %vm213_vm12, nan, %v222_v38 }
  0x55   :  { %v225_v40 = vmul.f32 %v223_v39, %v223_v39 }
  0x57   :  { %v226_v41 = vsel %vm224_vm13, %v225_v40, 0.0 }
  0x58   :  { %v231_v26 = vrot.slane %v226_v41, %v28_v44  ;;  %v235_v27 = vrot.slane %v226_v41, %v32_v46 }
  0x81   :  { %v49_v49 = vpop.permute.xlu1 %48  ;;  %v39_v50 = vpop.permute.xlu0 %38 }
  0x82   :  { %v56_v6 = vsub.f32 %v29_v47, %v39_v50  ;;  %v57_v51 = vsub.f32 %v33_v48, %v39_v50  ;;  %v60_v56 = vsub.f32 %v29_v47, %v49_v49  ;;  %v61_v62 = vsub.f32 %v33_v48, %v49_v49 }
  0x84   :  { %v64_v57 = vmul.f32 %v56_v6, %v56_v6  ;;  %v65_v59 = vmul.f32 %v57_v51, %v57_v51  ;;  %v68_v7 = vmul.f32 %v60_v56, %v60_v56  ;;  %v69_v14 = vmul.f32 %v61_v62, %v61_v62 }
  0x85   :  { %v54_v52 = vpop.permute.xlu1 %53  ;;  %v44_v53 = vpop.permute.xlu0 %43 }
  0x86   :  { %v58_v54 = vsub.f32 %v29_v47, %v44_v53  ;;  %v59_v55 = vsub.f32 %v33_v48, %v44_v53  ;;  %v62_v58 = vsub.f32 %v29_v47, %v54_v52  ;;  %v63_v3 = vsub.f32 %v33_v48, %v54_v52  ;;  %v246_v47 = vld [vmem:[%s543_s3] sm:$0xff]  ;;  %v247_v48 = vld [vmem:[%s543_s3 + $0x8] sm:$0xff] }
  0x88   :  { %v66_v60 = vmul.f32 %v58_v54, %v58_v54  ;;  %v67_v61 = vmul.f32 %v59_v55, %v59_v55  ;;  %v70_v8 = vmul.f32 %v62_v58, %v62_v58  ;;  %v71_v9 = vmul.f32 %v63_v3, %v63_v3 }
  0x89   :  { %v84_v63 = vpop.permute.xlu1 %83  ;;  %v79_v0 = vpop.permute.xlu0 %78 }
  0x8a   :  { %v98_v1 = vmul.f32 %v84_v63, %v66_v60  ;;  %v99_v2 = vmul.f32 %v84_v63, %v67_v61  ;;  %v96_v4 = vmul.f32 %v79_v0, %v64_v57  ;;  %v97_v5 = vmul.f32 %v79_v0, %v65_v59 }
  0x8c   :  { %v108_v10 = vmul.f32 1.442695, %v98_v1  ;;  %v110_v12 = vmul.f32 1.442695, %v99_v2  ;;  %v104_v13 = vmul.f32 1.442695, %v96_v4 }
  0x8d   :  { %v106_v15 = vmul.f32 1.442695, %v97_v5  ;;  %v94_v16 = vpop.permute.xlu1 %93  ;;  %v89_v17 = vpop.permute.xlu0 %88 }
  0x8e   :  { %393 = vpow2.f32 %v108_v10  ;;  %v102_v18 = vmul.f32 %v94_v16, %v70_v8  ;;  %v103_v19 = vmul.f32 %v94_v16, %v71_v9  ;;  %v100_v20 = vmul.f32 %v89_v17, %v68_v7 }
  0x8f   :  { %395 = vpow2.f32 %v110_v12  ;;  %v101_v21 = vmul.f32 %v89_v17, %v69_v14 }
  0x90   :  { %397 = vpow2.f32 %v104_v13  ;;  %v116_v22 = vmul.f32 1.442695, %v102_v18  ;;  %v118_v23 = vmul.f32 1.442695, %v103_v19  ;;  %v112_v24 = vmul.f32 1.442695, %v100_v20 }
  0x91   :  { %399 = vpow2.f32 %v106_v15  ;;  %v114_v25 = vmul.f32 1.442695, %v101_v21 }
  0x92   :  { %401 = vpow2.f32 %v116_v22 }
  0x93   :  { %403 = vpow2.f32 %v118_v23 }
  0x94   :  { %405 = vpow2.f32 %v112_v24 }
  0x95   :  { %407 = vpow2.f32 %v114_v25 }
  0x98   :  { %v394_v28 = vpop.eup %393 }
  0x99   :  { %v396_v29 = vpop.eup %395  ;;  %v240_v30 = vmul.f32 %v394_v28, %v231_v26 }
  0x9a   :  { %v398_v31 = vpop.eup %397  ;;  %v241_v32 = vmul.f32 %v396_v29, %v235_v27 }
  0x9b   :  { %v400_v33 = vpop.eup %399  ;;  %v238_v34 = vmul.f32 %v398_v31, %v231_v26 }
  0x9c   :  { %v402_v35 = vpop.eup %401  ;;  %v239_v36 = vmul.f32 %v400_v33, %v235_v27 }
  0x9d   :  { %v404_v11 = vpop.eup %403  ;;  %v360_v37 = vpack.c.bf16 %v240_v30, %v238_v34  ;;  %v244_v38 = vmul.f32 %v402_v35, %v231_v26 }
  0x9e   :  { %v406_v39 = vpop.eup %405  ;;  %v358_v40 = vpack.c.bf16 %v241_v32, %v239_v36  ;;  %v245_v42 = vmul.f32 %v404_v11, %v235_v27 }
  0x9f   :  { %v408_v43 = vpop.eup %407  ;;  %v242_v45 = vmul.f32 %v406_v39, %v231_v26 }
  0xa0   :  { %359 = vmatprep.subr.bf16.mxu0 %v358_v40  ;;  %366 = vmatprep.subr.bf16.mxu1 %v358_v40  ;;  %v243_v41 = vmul.f32 %v408_v43, %v235_v27 }
  0xa1   :  { %361 = vmatpush1.bf16.msra.mxu0 %v360_v37  ;;  %368 = vmatpush1.bf16.msra.mxu1 %v360_v37  ;;  %v364_v44 = vpack.c.bf16 %v244_v38, %v242_v45 }
  0xa2   :  { %v362_v46 = vpack.c.bf16 %v245_v42, %v243_v41 }
  0xa4   :  { %363 = vmatprep.subr.bf16.mxu0 %v362_v46  ;;  %367 = vmatprep.subr.bf16.mxu1 %v362_v46 }
  0xa5   :  { %365 = vmatpush1.bf16.msra.mxu0 %v364_v44  ;;  %369 = vmatpush1.bf16.msra.mxu1 %v364_v44 }
  0xa8   :  { %356 = vmatmul.mubr.msk.f32.vlgmr.msra.gmra.mrb[0].mxu0 %vm248_vm14, %v246_v47  ;;  %357 = vmatmul.mubr.msk.f32.vlgmr.msra.gmra.mrb[0].mxu1 %vm248_vm14, %v247_v48 }
 0x17b   :  { %v321_v49 = vpop.f32.mrb[0].mxu0  ;;  %v327_v50 = vpop.f32.mrb[0].mxu1 }
 0x17c   :  { %332 = vst [vmem:[#allocation2] sm:$0xff] %v321_v49  ;;  %334 = vst [vmem:[#allocation2 + $0x10] sm:$0xff] %v327_v50  ;;  %v323_v6 = vpop.f32.mrb[1].mxu0  ;;  %v329_v51 = vpop.f32.mrb[1].mxu1 }
 0x17d   :  { %333 = vst [vmem:[#allocation2 + $0x8] sm:$0xff] %v323_v6  ;;  %335 = vst [vmem:[#allocation2 + $0x18] sm:$0xff] %v329_v51 }
 0x17e   :  { %420 = shalt.err (!%p417_p4)
}
 0x17f   :  { %s421_s12 = scalar_lea.hbm %s544_s4, 512 }
 0x180   :  { %p422_p5 = scmp.ne.s32.totalorder %s544_s4, %s421_s12  ;;  %p425_p6 = scmp.lt.u32.totalorder %s421_s12, %s544_s4 }
 0x182   :  { %p427_p7 = pnand %p425_p6, %p422_p5 }
 0x184   :  { %430 = shalt.err (!%p427_p7)
}
 0x185   :  { %s442_s17 = smov 256   ;;  %s443_s18 = smov 16  }
 0x186   :  { %347 = dma.vmem_to_hbm [thread:$0]  %s342_s9, 512, %s544_s4, [#allocation3], %s442_s17, %s442_s17, %s443_s18  }
 0x187   :  { %431 = dma.done.wait [#allocation3], 512  }
 0x188   :  { %432 = vsyncadd [#allocation3], 4294966784 }
 0x189   :  { %351 = vsyncpa [#allocation3], 1 }

</bundles_post_ra>
